<compile_context>
chip_gen: v6e
topology: v6e:2x2x1
jax: 0.10.0
libtpu: 0.0.40
codegen_flags: <defaults>
</compile_context>

<pallas_src>
import functools

import jax
import jax.numpy as jnp
from jax.experimental import pallas as pl
from jax.experimental.pallas import tpu as pltpu


_NEG = -1.0e30  # bias for padded class lanes: exp(pad - max) == 0, no NaN risk


def _round_up(x, m):
    return ((x + m - 1) // m) * m


# ----------------------------- Pallas kernel -------------------------------- #
def _netmlp_kernel(x_ref,    # (TB, F)   f32 flattened features
                   w1_ref,   # (F,  Hp)  bf16
                   w3_ref,   # (Hp, Hp)  bf16
                   w4_ref,   # (Hp, Ep)  bf16
                   w2_ref,   # (Ep, Cp)  bf16
                   b_ref,    # (4, PAD)  f32 packed biases [b1; b3; b4; b2]
                   out_ref,  # (TB, Cp)  f32 (lane-dense, Cp = round_up(C,128))
                   *, apply_softmax):
    Hp = w1_ref.shape[1]
    Ep = w4_ref.shape[1]
    Cp = w2_ref.shape[1]

    # f32 from HBM; cast to bf16 on the VPU (hidden under DMA/MXU latency).
    x = x_ref[...].astype(jnp.bfloat16)

    # packed biases (single small DMA); static slices, one-time cost
    b1 = b_ref[0:1, 0:Hp]
    b3 = b_ref[1:2, 0:Hp]
    b4 = b_ref[2:3, 0:Ep]
    b2 = b_ref[3:4, 0:Cp]

    # layer1 + ReLU (bf16 MXU operands, f32 accumulation)
    h = jnp.dot(x, w1_ref[...], preferred_element_type=jnp.float32) + b1
    h = jnp.maximum(h, 0.0)
    # layer3 + ReLU
    h = jnp.dot(h.astype(jnp.bfloat16), w3_ref[...],
                preferred_element_type=jnp.float32) + b3
    h = jnp.maximum(h, 0.0)
    # layer4 + ReLU
    h = jnp.dot(h.astype(jnp.bfloat16), w4_ref[...],
                preferred_element_type=jnp.float32) + b4
    h = jnp.maximum(h, 0.0)
    # layer2 (output projection); padded class lanes carry bias = -1e30
    logits = jnp.dot(h.astype(jnp.bfloat16), w2_ref[...],
                     preferred_element_type=jnp.float32) + b2

    if apply_softmax:
        m = jnp.max(logits, axis=-1, keepdims=True)
        e = jnp.exp(logits - m)            # padded lanes -> exp(-huge) == 0
        s = jnp.sum(e, axis=-1, keepdims=True)
        out_ref[...] = (e / s).astype(out_ref.dtype)   # exact: rows sum to 1
    else:
        out_ref[...] = logits.astype(out_ref.dtype)


# ----------------------------- param preparation ---------------------------- #
def prepare_params(params, *, task_type="classification"):
    """One-time conversion OUTSIDE the per-call jit path:
    bf16 weights zero-padded to lane-aligned dims + packed f32 bias array."""
    w1 = params["w1"].astype(jnp.float32)
    w3 = params["w3"].astype(jnp.float32)
    w4 = params["w4"].astype(jnp.float32)
    w2 = params["w2"].astype(jnp.float32)
    b1 = params["b1"].astype(jnp.float32)
    b3 = params["b3"].astype(jnp.float32)
    b4 = params["b4"].astype(jnp.float32)
    b2 = params["b2"].astype(jnp.float32)

    F, H = w1.shape
    E = w4.shape[1]
    C = w2.shape[1]
    Hp = _round_up(H, 128)
    Ep = _round_up(E, 128)
    Cp = _round_up(C, 128)

    def pad2(w, rows, cols):
        return jnp.pad(w, ((0, rows - w.shape[0]), (0, cols - w.shape[1])))

    # zero padding is mathematically identical: padded hidden lanes stay 0
    w1p = pad2(w1, F, Hp).astype(jnp.bfloat16)
    w3p = pad2(w3, Hp, Hp).astype(jnp.bfloat16)
    w4p = pad2(w4, Hp, Ep).astype(jnp.bfloat16)
    w2p = pad2(w2, Ep, Cp).astype(jnp.bfloat16)

    pad_w = max(Hp, Ep, Cp)

    def row(b, pad_val=0.0):
        b = b.reshape(1, -1)
        return jnp.pad(b, ((0, 0), (0, pad_w - b.shape[1])),
                       constant_values=pad_val)

    # padded class lanes must not contribute to the softmax denominator
    b2_pad = _NEG if task_type == "classification" else 0.0
    b_packed = jnp.concatenate(
        [row(b1), row(b3), row(b4), row(b2, b2_pad)], axis=0)   # (4, pad_w) f32

    return {"w1": w1p, "w3": w3p, "w4": w4p, "w2": w2p, "b_packed": b_packed}


# ----------------------------- wrapper / glue -------------------------------- #
def netmlp_forward(features, prepped, *, out_channels,
                   task_type="classification"):
    """features: (B, in_dim, n_sequences) float32; prepped from prepare_params."""
    B = features.shape[0]
    w1, w3, w4, w2 = prepped["w1"], prepped["w3"], prepped["w4"], prepped["w2"]
    b_packed = prepped["b_packed"]
    F = w1.shape[0]
    Hp, Ep, Cp = w1.shape[1], w4.shape[1], w2.shape[1]

    # free view, no gather; stays f32 — the kernel does the bf16 cast
    x = features.reshape(B, F).astype(jnp.float32)

    # batch tile: multiple of 16, up to 512; two balanced blocks where possible
    # (the "parallel" grid axis then splits across v7x's two TensorCores)
    tb = min(512, _round_up(B, 16))
    if tb < B < 2 * tb:
        tb = _round_up(-(-B // 2), 16)
    padded_b = _round_up(B, tb)
    if padded_b != B:
        x = jnp.pad(x, ((0, padded_b - B), (0, 0)))
    num_blocks = padded_b // tb

    # advisory cost estimate for XLA's scheduler around the custom call
    wflops = F * Hp + Hp * Hp + Hp * Ep + Ep * Cp
    cost = pl.CostEstimate(
        flops=2 * padded_b * wflops,
        transcendentals=(padded_b * Cp if task_type == "classification" else 0),
        bytes_accessed=(4 * padded_b * F + 2 * wflops
                        + 4 * b_packed.shape[0] * b_packed.shape[1]
                        + 4 * padded_b * Cp))

    kernel = functools.partial(_netmlp_kernel,
                               apply_softmax=(task_type == "classification"))

    out = pl.pallas_call(
        kernel,
        out_shape=jax.ShapeDtypeStruct((padded_b, Cp), jnp.float32),
        grid=(num_blocks,),
        in_specs=[
            pl.BlockSpec((tb, F), lambda i: (i, 0)),          # features, batch-tiled
            pl.BlockSpec(w1.shape, lambda i: (0, 0)),          # weights: resident
            pl.BlockSpec(w3.shape, lambda i: (0, 0)),
            pl.BlockSpec(w4.shape, lambda i: (0, 0)),
            pl.BlockSpec(w2.shape, lambda i: (0, 0)),
            pl.BlockSpec(b_packed.shape, lambda i: (0, 0)),    # packed biases
        ],
        out_specs=pl.BlockSpec((tb, Cp), lambda i: (i, 0)),    # lane-dense store
        compiler_params=pltpu.CompilerParams(
            dimension_semantics=("parallel",)),
        cost_estimate=cost,
    )(x, w1, w3, w4, w2, b_packed)

    return out[:B, :out_channels]


def init_params(key, *, in_dim, n_sequences, hidden_dim, end_channels,
                output_channels):
    """Glorot-uniform weights, zero biases (matches MLPLayer's initializers)."""
    F = in_dim * n_sequences
    H, E, C = hidden_dim, end_channels, output_channels
    keys = jax.random.split(key, 4)

    def glorot(k, fan_in, fan_out):
        bound = jnp.sqrt(6.0 / (fan_in + fan_out)).astype(jnp.float32)
        return jax.random.uniform(k, (fan_in, fan_out), jnp.float32, -bound, bound)

    return {
        "w1": glorot(keys[0], F, H), "b1": jnp.zeros((H,), jnp.float32),
        "w3": glorot(keys[1], H, H), "b3": jnp.zeros((H,), jnp.float32),
        "w4": glorot(keys[2], H, E), "b4": jnp.zeros((E,), jnp.float32),
        "w2": glorot(keys[3], E, C), "b2": jnp.zeros((C,), jnp.float32),
    }


def netmlp_reference(features, params, task_type):
    """Pure-JAX reference (f32) for a correctness check."""
    B = features.shape[0]
    x = features.reshape(B, -1)
    h = jax.nn.relu(x @ params["w1"] + params["b1"])
    h = jax.nn.relu(h @ params["w3"] + params["b3"])
    h = jax.nn.relu(h @ params["w4"] + params["b4"])
    logits = h @ params["w2"] + params["b2"]
    if task_type == "classification":
        return jax.nn.softmax(logits, axis=1)
    return logits


if __name__ == "__main__":
    # Small shapes consistent with the module's forward.
    B, in_dim, n_seq = 8, 6, 8            # batch, features per step, sequence length
    hidden_dim = 32
    end_channels = 32
    out_channels = 3                      # classification -> softmax over classes
    task = "classification"

    key = jax.random.PRNGKey(0)
    k_x, k_p = jax.random.split(key)

    features = jax.random.normal(k_x, (B, in_dim, n_seq), jnp.float32)
    params = init_params(
        k_p,
        in_dim=in_dim, n_sequences=n_seq,
        hidden_dim=hidden_dim, end_channels=end_channels,
        output_channels=out_channels,
    )

    # one-time bf16 / pad / bias-pack, outside the per-call jit path
    prepped = prepare_params(params, task_type=task)

    fwd = jax.jit(functools.partial(netmlp_forward,
                                    out_channels=out_channels, task_type=task))
    out = jax.block_until_ready(fwd(features, prepped))

    ref = netmlp_reference(features, params, task)

    assert out.shape == (B, out_channels)
    assert bool(jnp.all(jnp.isfinite(out)))
    # exact softmax divide -> rows sum to 1 within f32 rounding
    assert bool(jnp.allclose(jnp.sum(out, axis=-1), 1.0, atol=1e-3))
    # matches the f32 reference within bf16 matmul tolerance
    assert bool(jnp.allclose(out, ref, atol=3e-2, rtol=5e-2))
    print("KERNEL_OK")
</pallas_src>

<mosaic_0001>
module attributes {stable_mosaic.version = 11 : i64} {
  func.func @_netmlp_kernel(%arg0: i32, %arg1: memref<16x48xf32, #tpu.memory_space<vmem>>, %arg2: memref<48x128xbf16, #tpu.memory_space<vmem>>, %arg3: memref<128x128xbf16, #tpu.memory_space<vmem>>, %arg4: memref<128x128xbf16, #tpu.memory_space<vmem>>, %arg5: memref<128x128xbf16, #tpu.memory_space<vmem>>, %arg6: memref<4x128xf32, #tpu.memory_space<vmem>>, %arg7: memref<16x128xf32, #tpu.memory_space<vmem>>) attributes {dimension_semantics = [#tpu.dimension_semantics<parallel>], iteration_bounds = array<i64: 1>, scalar_prefetch = 0 : i64, scratch_operands = 0 : i64, tpu.core_type = #tpu.core_type<tc>, window_params = [{transform_indices = @transform_0, window_bounds = array<i64: 16, 48>}, {pipeline_mode = #tpu.pipeline_mode<synchronous>, transform_indices = @transform_1, window_bounds = array<i64: 48, 128>}, {pipeline_mode = #tpu.pipeline_mode<synchronous>, transform_indices = @transform_2, window_bounds = array<i64: 128, 128>}, {pipeline_mode = #tpu.pipeline_mode<synchronous>, transform_indices = @transform_3, window_bounds = array<i64: 128, 128>}, {pipeline_mode = #tpu.pipeline_mode<synchronous>, transform_indices = @transform_4, window_bounds = array<i64: 128, 128>}, {pipeline_mode = #tpu.pipeline_mode<synchronous>, transform_indices = @transform_5, window_bounds = array<i64: 4, 128>}, {transform_indices = @transform_6, window_bounds = array<i64: 16, 128>}]} {
    %c0 = arith.constant 0 : index
    %c0_0 = arith.constant 0 : index
    %0 = vector.load %arg1[%c0, %c0_0] : memref<16x48xf32, #tpu.memory_space<vmem>>, vector<16x48xf32>
    %1 = arith.truncf %0 : vector<16x48xf32> to vector<16x48xbf16>
    %c0_1 = arith.constant 0 : index
    %c0_2 = arith.constant 0 : index
    %2 = vector.load %arg6[%c0_1, %c0_2] : memref<4x128xf32, #tpu.memory_space<vmem>>, vector<1x128xf32>
    %c1 = arith.constant 1 : index
    %c0_3 = arith.constant 0 : index
    %3 = vector.load %arg6[%c1, %c0_3] : memref<4x128xf32, #tpu.memory_space<vmem>>, vector<1x128xf32>
    %c2 = arith.constant 2 : index
    %c0_4 = arith.constant 0 : index
    %4 = vector.load %arg6[%c2, %c0_4] : memref<4x128xf32, #tpu.memory_space<vmem>>, vector<1x128xf32>
    %c3 = arith.constant 3 : index
    %c0_5 = arith.constant 0 : index
    %5 = vector.load %arg6[%c3, %c0_5] : memref<4x128xf32, #tpu.memory_space<vmem>>, vector<1x128xf32>
    %c0_6 = arith.constant 0 : index
    %c0_7 = arith.constant 0 : index
    %6 = vector.load %arg2[%c0_6, %c0_7] : memref<48x128xbf16, #tpu.memory_space<vmem>>, vector<48x128xbf16>
    %cst = arith.constant dense<0.000000e+00> : vector<16x128xf32>
    %7 = tpu.matmul %1, %6, %cst {dimension_numbers = #tpu.dot_dimension_numbers<[1], [0], [0], [1], [0, 0, 1, 1], [], []>} : vector<16x48xbf16>, vector<48x128xbf16>, vector<16x128xf32> -> vector<16x128xf32>
    %8 = vector.broadcast %2 : vector<1x128xf32> to vector<16x128xf32>
    %9 = arith.addf %7, %8 : vector<16x128xf32>
    %cst_8 = arith.constant 0.000000e+00 : f32
    %10 = vector.broadcast %cst_8 : f32 to vector<16x128xf32>
    %11 = arith.maximumf %9, %10 : vector<16x128xf32>
    %12 = arith.truncf %11 : vector<16x128xf32> to vector<16x128xbf16>
    %c0_9 = arith.constant 0 : index
    %c0_10 = arith.constant 0 : index
    %13 = vector.load %arg3[%c0_9, %c0_10] : memref<128x128xbf16, #tpu.memory_space<vmem>>, vector<128x128xbf16>
    %cst_11 = arith.constant dense<0.000000e+00> : vector<16x128xf32>
    %14 = tpu.matmul %12, %13, %cst_11 {dimension_numbers = #tpu.dot_dimension_numbers<[1], [0], [0], [1], [0, 0, 1, 1], [], []>} : vector<16x128xbf16>, vector<128x128xbf16>, vector<16x128xf32> -> vector<16x128xf32>
    %15 = vector.broadcast %3 : vector<1x128xf32> to vector<16x128xf32>
    %16 = arith.addf %14, %15 : vector<16x128xf32>
    %cst_12 = arith.constant 0.000000e+00 : f32
    %17 = vector.broadcast %cst_12 : f32 to vector<16x128xf32>
    %18 = arith.maximumf %16, %17 : vector<16x128xf32>
    %19 = arith.truncf %18 : vector<16x128xf32> to vector<16x128xbf16>
    %c0_13 = arith.constant 0 : index
    %c0_14 = arith.constant 0 : index
    %20 = vector.load %arg4[%c0_13, %c0_14] : memref<128x128xbf16, #tpu.memory_space<vmem>>, vector<128x128xbf16>
    %cst_15 = arith.constant dense<0.000000e+00> : vector<16x128xf32>
    %21 = tpu.matmul %19, %20, %cst_15 {dimension_numbers = #tpu.dot_dimension_numbers<[1], [0], [0], [1], [0, 0, 1, 1], [], []>} : vector<16x128xbf16>, vector<128x128xbf16>, vector<16x128xf32> -> vector<16x128xf32>
    %22 = vector.broadcast %4 : vector<1x128xf32> to vector<16x128xf32>
    %23 = arith.addf %21, %22 : vector<16x128xf32>
    %cst_16 = arith.constant 0.000000e+00 : f32
    %24 = vector.broadcast %cst_16 : f32 to vector<16x128xf32>
    %25 = arith.maximumf %23, %24 : vector<16x128xf32>
    %26 = arith.truncf %25 : vector<16x128xf32> to vector<16x128xbf16>
    %c0_17 = arith.constant 0 : index
    %c0_18 = arith.constant 0 : index
    %27 = vector.load %arg5[%c0_17, %c0_18] : memref<128x128xbf16, #tpu.memory_space<vmem>>, vector<128x128xbf16>
    %cst_19 = arith.constant dense<0.000000e+00> : vector<16x128xf32>
    %28 = tpu.matmul %26, %27, %cst_19 {dimension_numbers = #tpu.dot_dimension_numbers<[1], [0], [0], [1], [0, 0, 1, 1], [], []>} : vector<16x128xbf16>, vector<128x128xbf16>, vector<16x128xf32> -> vector<16x128xf32>
    %29 = vector.broadcast %5 : vector<1x128xf32> to vector<16x128xf32>
    %30 = arith.addf %28, %29 : vector<16x128xf32>
    %cst_20 = arith.constant dense<0xFF800000> : vector<16xf32>
    %31 = vector.multi_reduction <maximumf>, %30, %cst_20 [1] : vector<16x128xf32> to vector<16xf32>
    %32 = vector.shape_cast %31 : vector<16xf32> to vector<16x1xf32>
    %33 = vector.broadcast %32 : vector<16x1xf32> to vector<16x128xf32>
    %34 = arith.subf %30, %33 : vector<16x128xf32>
    %35 = math.exp %34 : vector<16x128xf32>
    %cst_21 = arith.constant dense<0.000000e+00> : vector<16xf32>
    %36 = vector.multi_reduction <add>, %35, %cst_21 [1] : vector<16x128xf32> to vector<16xf32>
    %37 = vector.shape_cast %36 : vector<16xf32> to vector<16x1xf32>
    %38 = vector.broadcast %37 : vector<16x1xf32> to vector<16x128xf32>
    %39 = arith.divf %35, %38 : vector<16x128xf32>
    %c0_22 = arith.constant 0 : index
    %c0_23 = arith.constant 0 : index
    %40 = vector.load %arg7[%c0_22, %c0_23] : memref<16x128xf32, #tpu.memory_space<vmem>>, vector<16x128xf32>
    tpu.vector_store %arg7[%c0_22, %c0_23], %39 {strides = array<i32>} : memref<16x128xf32, #tpu.memory_space<vmem>>, vector<16x128xf32>,
    return
  }
  func.func @transform_0(%arg0: i32) -> (i32, i32) {
    %c0_i32 = arith.constant 0 : i32
    %c0_i32_0 = arith.constant 0 : i32
    return %arg0, %c0_i32 : i32, i32
  }
  func.func @transform_1(%arg0: i32) -> (i32, i32) {
    %c0_i32 = arith.constant 0 : i32
    %c0_i32_0 = arith.constant 0 : i32
    %c0_i32_1 = arith.constant 0 : i32
    return %c0_i32, %c0_i32_0 : i32, i32
  }
  func.func @transform_2(%arg0: i32) -> (i32, i32) {
    %c0_i32 = arith.constant 0 : i32
    %c0_i32_0 = arith.constant 0 : i32
    %c0_i32_1 = arith.constant 0 : i32
    return %c0_i32, %c0_i32_0 : i32, i32
  }
  func.func @transform_3(%arg0: i32) -> (i32, i32) {
    %c0_i32 = arith.constant 0 : i32
    %c0_i32_0 = arith.constant 0 : i32
    %c0_i32_1 = arith.constant 0 : i32
    return %c0_i32, %c0_i32_0 : i32, i32
  }
  func.func @transform_4(%arg0: i32) -> (i32, i32) {
    %c0_i32 = arith.constant 0 : i32
    %c0_i32_0 = arith.constant 0 : i32
    %c0_i32_1 = arith.constant 0 : i32
    return %c0_i32, %c0_i32_0 : i32, i32
  }
  func.func @transform_5(%arg0: i32) -> (i32, i32) {
    %c0_i32 = arith.constant 0 : i32
    %c0_i32_0 = arith.constant 0 : i32
    %c0_i32_1 = arith.constant 0 : i32
    return %c0_i32, %c0_i32_0 : i32, i32
  }
  func.func @transform_6(%arg0: i32) -> (i32, i32) {
    %c0_i32 = arith.constant 0 : i32
    %c0_i32_0 = arith.constant 0 : i32
    return %arg0, %c0_i32 : i32, i32
  }
}

</mosaic_0001>

<bundles_post_ra>
// kernel: netmlp_forward.1
= control target key start
LH: loop header
LB: loop body
LE: loop exit
PB: predicated region body
PF: predicated region fallthrough
CT: control target
= control target key end

     0   :  { %11 = vsyncpa [#allocation3], 0  ;;  %s674_s21 = smov [#allocation2]   ;;  %s848_s0 = inlined_call_operand.vmem [shape: f32[16,48], index: 0, kind: input, shape index: {}]   ;;  %s849_s1 = inlined_call_operand.hbm [shape: bf16[48,128], index: 1, kind: input, shape index: {}]   ;;  %s850_s2 = inlined_call_operand.vmem [shape: bf16[128,128], index: 2, kind: input, shape index: {}]   ;;  %s851_s3 = inlined_call_operand.vmem [shape: bf16[128,128], index: 3, kind: input, shape index: {}]   ;;  %s852_s4 = inlined_call_operand.vmem [shape: bf16[128,128], index: 4, kind: input, shape index: {}]   ;;  %s853_s5 = inlined_call_operand.vmem [shape: f32[4,128], index: 5, kind: input, shape index: {}]   ;;  %s854_s6 = inlined_call_operand.vmem [shape: f32[16,128], index: 6, kind: output, shape index: {}]  }
   0x1   :  { %s19_s22 = sshll.u32 %s674_s21, 4  ;;  %s20_s22 = int_to_ptr.vmem [resolvable:$true] %s19_s22 }
   0x2   :  { %s660_s23 = scalar_lea.vmem %s20_s22, 384  ;;  %p665_p1 = scmp.lt.s32.totalorder %s20_s22, %s20_s22 }
   0x3   :  { %p661_p0 = scmp.ne.s32.totalorder %s20_s22, %s660_s23  ;;  %p666_p2 = scmp.lt.s32.totalorder %s660_s23, %s660_s23 }
   0x5   :  { %p667_p3 = por %p666_p2, %p665_p1 }
   0x7   :  { %p668_p4 = pnand %p667_p3, %p661_p0 }
   0x9   :  { %671 = shalt.err (!%p668_p4)
}
   0xa   :  { %s675_s24 = smov 64   ;;  %s676_s25 = smov 4  }
   0xb   :  { %25 = dma.hbm_to_vmem [thread:$0]  %s849_s1, 384, %s20_s22, [#allocation3], %s675_s24, %s675_s24, %s676_s25  }
   0xc   :  { %672 = dma.done.wait [#allocation3], 384  }
   0xd   :  { %673 = vsyncadd [#allocation3], 4294966912  ;;  %v677_v0 = vmov 0.0   ;;  %vm678_vm0 = vmmov 0   ;;  %v617_v1 = vld [vmem:[#allocation2 + $0x10] sm:$0xff]   ;;  %v618_v2 = vld [vmem:[#allocation2 + $0x8] sm:$0xff]  }
   0xe   :  { %542 = vmatprep.subr.bf16.mxu0 %v677_v0  ;;  %548 = vmatprep.mubr.msk.bf16.mxu0 %vm678_vm0, %v677_v0  ;;  %v619_v3 = vld [vmem:[#allocation2] sm:$0xff]   ;;  %v620_v5 = vld [vmem:[%s850_s2 + $0x38] sm:$0xff]   ;;  %v39_v6 = vld [vmem:[%s848_s0 + $0x8] sm:$0xff]  ;;  %vm73_vm1 = vcmask 392192  }
   0xf   :  { %552 = vmatprep.subr.bf16.mxu1 %v677_v0  ;;  %568 = vmatprep.mubr.msk.bf16.mxu1 %vm678_vm0, %v677_v0  ;;  %v38_v4 = vld [vmem:[%s848_s0] sm:$0xff]  ;;  %v621_v7 = vld [vmem:[%s850_s2 + $0x30] sm:$0xff]   ;;  %v622_v8 = vld [vmem:[%s850_s2 + $0x28] sm:$0xff]  }
  0x10   :  { %543 = vmatpush3.bf16.msra.mxu0 %v617_v1  ;;  %553 = vmatpush3.bf16.msra.mxu1 %v620_v5  ;;  %v40_v9 = vpack.c.bf16 %v39_v6, %v38_v4  ;;  %v623_v10 = vld [vmem:[%s850_s2 + $0x20] sm:$0xff]   ;;  %v624_v11 = vld [vmem:[%s850_s2 + $0x18] sm:$0xff]   ;;  %v625_v12 = vld [vmem:[%s850_s2 + $0x10] sm:$0xff]  }
  0x11   :  { %544 = vmatprep.subr.bf16.mxu0 %v677_v0  ;;  %554 = vmatprep.subr.bf16.mxu1 %v677_v0  ;;  %v626_v13 = vld [vmem:[%s850_s2 + $0x8] sm:$0xff]   ;;  %v627_v14 = vld [vmem:[%s850_s2] sm:$0xff]   ;;  %v628_v15 = vld [vmem:[%s851_s3 + $0x38] sm:$0xff]  }
  0x12   :  { %v629_v16 = vld [vmem:[%s851_s3 + $0x30] sm:$0xff]   ;;  %v630_v17 = vld [vmem:[%s851_s3 + $0x28] sm:$0xff]   ;;  %v631_v18 = vld [vmem:[%s851_s3 + $0x20] sm:$0xff]  }
  0x13   :  { %v632_v19 = vld [vmem:[%s851_s3 + $0x18] sm:$0xff]   ;;  %v479_v20 = vld [vmem:[%s853_s5] ss:$0 sm:$0xff]  ;;  %v633_v30 = vld [vmem:[%s851_s3 + $0x10] sm:$0xff]  }
  0x14   :  { %545 = vmatpush3.bf16.msra.mxu0 %v618_v2  ;;  %555 = vmatpush3.bf16.msra.mxu1 %v621_v7  ;;  %v634_v31 = vld [vmem:[%s851_s3 + $0x8] sm:$0xff]   ;;  %v635_v32 = vld [vmem:[%s851_s3] sm:$0xff]   ;;  %v636_v33 = vld [vmem:[%s852_s4 + $0x38] sm:$0xff]  }
  0x15   :  { %546 = vmatprep.subr.bf16.mxu0 %v677_v0  ;;  %556 = vmatprep.subr.bf16.mxu1 %v677_v0  ;;  %v637_v34 = vld [vmem:[%s852_s4 + $0x30] sm:$0xff]   ;;  %v638_v35 = vld [vmem:[%s852_s4 + $0x28] sm:$0xff]   ;;  %v639_v36 = vld [vmem:[%s852_s4 + $0x20] sm:$0xff]  }
  0x16   :  { %v640_v37 = vld [vmem:[%s852_s4 + $0x18] sm:$0xff]   ;;  %v484_v38 = vld [vmem:[%s853_s5 + $0x1] ss:$0 sm:$0xff]  ;;  %v641_v48 = vld [vmem:[%s852_s4 + $0x10] sm:$0xff]  }
  0x17   :  { %v642_v49 = vld [vmem:[%s852_s4 + $0x8] sm:$0xff]   ;;  %v643_v50 = vld [vmem:[%s852_s4] sm:$0xff]  }
  0x18   :  { %547 = vmatpush3.bf16.msra.mxu0 %v619_v3  ;;  %557 = vmatpush3.bf16.msra.mxu1 %v622_v8  ;;  %v493_v51 = vld [vmem:[%s853_s5 + $0x2] ss:$0 sm:$0xff]  ;;  %v502_v61 = vld [vmem:[%s853_s5 + $0x3] ss:$0 sm:$0xff] }
  0x19   :  { %572 = vmatprep.subr.bf16.mxu0 %v677_v0  ;;  %558 = vmatprep.subr.bf16.mxu1 %v677_v0 }
  0x1b   :  { %549 = vmatmul.mubr.msk.bf16.vlgmr.msra.gmra.mxu0 %vm73_vm1, %v40_v9 }
  0x1c   :  { %588 = vmatprep.mubr.msk.bf16.mxu0 %vm678_vm0, %v677_v0  ;;  %559 = vmatpush3.bf16.msra.mxu1 %v623_v10 }
  0x1d   :  { %560 = vmatprep.subr.bf16.mxu1 %v677_v0  ;;  %573 = vmatpush3.bf16.msra.mxu0 %v628_v15 }
  0x1e   :  { %574 = vmatprep.subr.bf16.mxu0 %v677_v0 }
  0x20   :  { %561 = vmatpush3.bf16.msra.mxu1 %v624_v11 }
  0x21   :  { %562 = vmatprep.subr.bf16.mxu1 %v677_v0  ;;  %575 = vmatpush3.bf16.msra.mxu0 %v629_v16 }
  0x22   :  { %576 = vmatprep.subr.bf16.mxu0 %v677_v0 }
  0x24   :  { %563 = vmatpush3.bf16.msra.mxu1 %v625_v12 }
  0x25   :  { %564 = vmatprep.subr.bf16.mxu1 %v677_v0  ;;  %577 = vmatpush3.bf16.msra.mxu0 %v630_v17 }
  0x26   :  { %578 = vmatprep.subr.bf16.mxu0 %v677_v0 }
  0x28   :  { %565 = vmatpush3.bf16.msra.mxu1 %v626_v13 }
  0x29   :  { %566 = vmatprep.subr.bf16.mxu1 %v677_v0  ;;  %579 = vmatpush3.bf16.msra.mxu0 %v631_v18 }
  0x2a   :  { %580 = vmatprep.subr.bf16.mxu0 %v677_v0 }
  0x2c   :  { %567 = vmatpush3.bf16.msra.mxu1 %v627_v14 }
  0x2d   :  { %592 = vmatprep.subr.bf16.mxu1 %v677_v0  ;;  %581 = vmatpush3.bf16.msra.mxu0 %v632_v19 }
  0x2e   :  { %582 = vmatprep.subr.bf16.mxu0 %v677_v0 }
  0x31   :  { %583 = vmatpush3.bf16.msra.mxu0 %v633_v30 }
  0x32   :  { %584 = vmatprep.subr.bf16.mxu0 %v677_v0 }
  0x35   :  { %585 = vmatpush3.bf16.msra.mxu0 %v634_v31 }
  0x36   :  { %586 = vmatprep.subr.bf16.mxu0 %v677_v0 }
  0x39   :  { %587 = vmatpush3.bf16.msra.mxu0 %v635_v32 }
  0xdb   :  { %v111_v21 = vpop.f32.mrf.mxu0 }
  0xdc   :  { %v112_v23 = vadd.f32 %v479_v20, %v111_v21 }
  0xdd   :  { %v550_v22 = vpop.f32.mrf.mxu0 }
  0xde   :  { %v118_v27 = vmax.f32 %v112_v23, 0.0 }
  0xdf   :  { %v114_v24 = vpop.f32.mrf.mxu0 }
  0xe0   :  { %v115_v25 = vadd.f32 %v479_v20, %v114_v24 }
  0xe1   :  { %v551_v26 = vpop.f32.mrf.mxu0 }
  0xe2   :  { %v119_v28 = vmax.f32 %v115_v25, 0.0 }
  0xe4   :  { %v120_v29 = vpack.c.bf16 %v119_v28, %v118_v27 }
  0xe6   :  { %569 = vmatmul.mubr.bf16.vlgmr.msra.gmra.mxu1 %v120_v29 }
  0xe7   :  { %608 = vmatprep.mubr.msk.bf16.mxu1 %vm678_vm0, %v677_v0  ;;  %593 = vmatpush3.bf16.msra.mxu1 %v636_v33 }
  0xe8   :  { %594 = vmatprep.subr.bf16.mxu1 %v677_v0 }
  0xeb   :  { %595 = vmatpush3.bf16.msra.mxu1 %v637_v34 }
  0xec   :  { %596 = vmatprep.subr.bf16.mxu1 %v677_v0 }
  0xef   :  { %597 = vmatpush3.bf16.msra.mxu1 %v638_v35 }
  0xf0   :  { %598 = vmatprep.subr.bf16.mxu1 %v677_v0 }
  0xf3   :  { %599 = vmatpush3.bf16.msra.mxu1 %v639_v36 }
  0xf4   :  { %600 = vmatprep.subr.bf16.mxu1 %v677_v0 }
  0xf7   :  { %601 = vmatpush3.bf16.msra.mxu1 %v640_v37 }
  0xf8   :  { %602 = vmatprep.subr.bf16.mxu1 %v677_v0 }
  0xfb   :  { %603 = vmatpush3.bf16.msra.mxu1 %v641_v48 }
  0xfc   :  { %604 = vmatprep.subr.bf16.mxu1 %v677_v0 }
  0xff   :  { %605 = vmatpush3.bf16.msra.mxu1 %v642_v49 }
 0x100   :  { %606 = vmatprep.subr.bf16.mxu1 %v677_v0 }
 0x103   :  { %607 = vmatpush3.bf16.msra.mxu1 %v643_v50 }
 0x1a6   :  { %v223_v39 = vpop.f32.mrf.mxu1 }
 0x1a7   :  { %v224_v41 = vadd.f32 %v484_v38, %v223_v39 }
 0x1a8   :  { %v570_v40 = vpop.f32.mrf.mxu1 }
 0x1a9   :  { %v230_v45 = vmax.f32 %v224_v41, 0.0 }
 0x1aa   :  { %v226_v42 = vpop.f32.mrf.mxu1 }
 0x1ab   :  { %v227_v43 = vadd.f32 %v484_v38, %v226_v42 }
 0x1ac   :  { %v571_v44 = vpop.f32.mrf.mxu1 }
 0x1ad   :  { %v231_v46 = vmax.f32 %v227_v43, 0.0 }
 0x1af   :  { %v232_v47 = vpack.c.bf16 %v231_v46, %v230_v45 }
 0x1b1   :  { %589 = vmatmul.mubr.bf16.vlgmr.msra.gmra.mxu0 %v232_v47 }
 0x271   :  { %v335_v52 = vpop.f32.mrf.mxu0 }
 0x272   :  { %v336_v54 = vadd.f32 %v493_v51, %v335_v52 }
 0x273   :  { %v590_v53 = vpop.f32.mrf.mxu0 }
 0x274   :  { %v342_v58 = vmax.f32 %v336_v54, 0.0 }
 0x275   :  { %v338_v55 = vpop.f32.mrf.mxu0 }
 0x276   :  { %v339_v56 = vadd.f32 %v493_v51, %v338_v55 }
 0x277   :  { %v591_v57 = vpop.f32.mrf.mxu0 }
 0x278   :  { %v343_v59 = vmax.f32 %v339_v56, 0.0 }
 0x27a   :  { %v344_v60 = vpack.c.bf16 %v343_v59, %v342_v58 }
 0x27c   :  { %609 = vmatmul.mubr.bf16.vlgmr.msra.gmra.mxu1 %v344_v60 }
 0x33c   :  { %v447_v62 = vpop.f32.mrf.mxu1 }
 0x33d   :  { %v448_v63 = vadd.f32 %v502_v61, %v447_v62 }
 0x33e   :  { %v610_v0 = vpop.f32.mrf.mxu1 }
 0x33f   :  { %454 = vmax.xlane.f32.xlu0 %v448_v63 }
 0x340   :  { %v450_v1 = vpop.f32.mrf.mxu1 }
 0x341   :  { %v451_v2 = vadd.f32 %v502_v61, %v450_v1 }
 0x342   :  { %v611_v3 = vpop.f32.mrf.mxu1 }
 0x343   :  { %456 = vmax.xlane.f32.xlu0 %v451_v2 }
 0x3c8   :  { %v455_v4 = vpop.xlane.xlu0 %454 }
 0x3c9   :  { %v458_v5 = vsub.f32 %v448_v63, %v455_v4 }
 0x3cb   :  { %v460_v6 = vmul.f32 1.442695, %v458_v5 }
 0x3cc   :  { %v457_v7 = vpop.xlane.xlu0 %456 }
 0x3cd   :  { %644 = vpow2.f32 %v460_v6  ;;  %v459_v8 = vsub.f32 %v451_v2, %v457_v7 }
 0x3cf   :  { %v462_v9 = vmul.f32 1.442695, %v459_v8 }
 0x3d1   :  { %646 = vpow2.f32 %v462_v9 }
 0x3da   :  { %v645_v10 = vpop.eup %644 }
 0x3db   :  { %464 = vadd.xlane.f32.xlu1 %v645_v10 }
 0x3de   :  { %v647_v11 = vpop.eup %646 }
 0x3df   :  { %466 = vadd.xlane.f32.xlu1 %v647_v11 }
 0x464   :  { %v465_v12 = vpop.xlane.xlu1 %464 }
 0x465   :  { %648 = vrcp.f32 %v465_v12 }
 0x468   :  { %v467_v13 = vpop.xlane.xlu1 %466 }
 0x469   :  { %650 = vrcp.f32 %v467_v13 }
 0x472   :  { %v649_v14 = vpop.eup %648 }
 0x473   :  { %v469_v15 = vmul.f32 %v649_v14, %v645_v10 }
 0x475   :  { %472 = vst [vmem:[%s854_s6] sm:$0xff] %v469_v15 }
 0x476   :  { %v651_v16 = vpop.eup %650 }
 0x477   :  { %v471_v17 = vmul.f32 %v651_v16, %v647_v11 }
 0x479   :  { %473 = vst [vmem:[%s854_s6 + $0x8] sm:$0xff] %v471_v17 }
 0x47a   :  { %478 = vsyncpa [#allocation3], 1 }

</bundles_post_ra>
